<compile_context>
chip_gen: v6e
topology: v6e:2x2x1
jax: 0.10.0
libtpu: 0.0.40
codegen_flags: <defaults>
</compile_context>

<pallas_src>
import jax
import jax.numpy as jnp
import numpy as np
from jax.experimental import pallas as pl
from jax.experimental.pallas import tpu as pltpu

_MIB = 1024 * 1024
_MAX_F32_BLOCK_BYTES = 4 * _MIB   # cap on one operand's f32 working set / block


# --------------------------------------------------------------------------- #
# Kernels
# --------------------------------------------------------------------------- #
def _rowwise_kernel(x_ref, o_ref):
    """Plain path: block = (tile_rows, K); K on lanes; reduce along lanes."""
    e = jnp.exp(x_ref[...].astype(jnp.float32))            # elementwise exp (EUP)
    denom = jnp.sum(e, axis=-1, keepdims=True)              # row-wise lane reduce (XLU)
    o_ref[...] = (e / denom).astype(o_ref.dtype)            # exact division


def _packed_kernel(x_ref, smat_ref, o_ref):
    """Lane-dense path for small K.

    x_ref:    (T, 128) block; each lane row packs 128 // K original rows.
    smat_ref: (128, 128) bf16 block-diagonal 0/1 matrix, DMA'd once (constant
              index_map) and resident in VMEM across every grid step.
    The denominator (broadcast back to every lane) is a segmented sum on the
    otherwise-idle MXU.  Because f32xf32 is not a native MXU mode, e is split
    into bf16 hi/lo parts; smat is exact in bf16, so two deterministic bf16
    passes recover the denominator to ~f32 accuracy (rel err ~2^-16).
    """
    e = jnp.exp(x_ref[...].astype(jnp.float32))              # (T, 128) f32
    smat = smat_ref[...]                                     # (128, 128) bf16
    e_hi = e.astype(jnp.bfloat16)
    e_lo = (e - e_hi.astype(jnp.float32)).astype(jnp.bfloat16)
    denom = (jnp.dot(e_hi, smat, preferred_element_type=jnp.float32)
             + jnp.dot(e_lo, smat, preferred_element_type=jnp.float32))
    o_ref[...] = (e / denom).astype(o_ref.dtype)             # exact division


# --------------------------------------------------------------------------- #
# Tiling / launch helpers
# --------------------------------------------------------------------------- #
def _round_up(x: int, m: int) -> int:
    return ((x + m - 1) // m) * m


def _round_down(x: int, m: int) -> int:
    return (x // m) * m


def _target_block_bytes() -> int:
    """Per-block streaming size (in HBM dtype).  Bigger on v7x, where faster
    HBM makes the fixed per-grid-step overhead relatively larger."""
    try:
        kind = jax.devices()[0].device_kind.lower()
    except Exception:  # pragma: no cover - defensive
        kind = ""
    if "7" in kind:            # TPU v7x
        return 4 * _MIB
    return 2 * _MIB            # v5e / v6e: ~85% of HBM roofline already


def _pick_tile_rows(n: int, k: int, itemsize: int, sub: int,
                    requested: int | None = None) -> int:
    """Choose a legal row tile: multiple of the sublane pack (or the full row
    count), ~target-block sized, with its f32 working set under the VMEM cap."""
    min_tile = min(n, sub)
    # Cap so double-buffered in+out plus f32 temporaries stay well under the
    # derived vmem_limit on every generation (v7x has only 64 MiB/TC).
    cap = max(min_tile, _round_down(_MAX_F32_BLOCK_BYTES // (k * 4), sub))
    if requested is not None:
        t = requested
    else:
        t = _round_down(_target_block_bytes() // max(k * itemsize, 1), sub)
        if t >= n and n > sub:
            # Whole problem fits one streaming block: use the most balanced
            # legal 2-block split (exact halves whenever N/2 is sublane-
            # aligned) so the "parallel" row axis keeps both of v7x's two
            # TensorCores busy.  Free on v5e/v6e (single TC).
            t = _round_up((n + 1) // 2, sub)
    t = min(t, cap)
    if t >= n:
        t = n                                       # single full-dim block (legal)
    else:
        t = max(min_tile, _round_down(t, sub))      # multiple of the sublane pack
    if t * k * 4 > (3 * _MAX_F32_BLOCK_BYTES) // 2:
        # TODO(synk): add a second ("arbitrary") grid axis over K with a VMEM
        # running-sum accumulator (two-pass sum-then-scale) for rows too wide
        # to fit a (tile_rows, K) f32 slab in VMEM.
        raise NotImplementedError(
            f"K={k} too wide for a single-row VMEM slab; K-axis reduction grid "
            "not implemented.")
    return t


def _segment_matrix(seg: int) -> jax.Array:
    """(128,128) block-diagonal 0/1 matrix: column j sums the length-`seg`
    segment containing j.  0/1 is exact in bf16 (native MXU operand dtype)."""
    idx = np.arange(128) // seg
    return jnp.asarray((idx[:, None] == idx[None, :]).astype(np.float32),
                       dtype=jnp.bfloat16)


def _launch(x: jax.Array, kernel, *, tile_rows: int | None, sub: int,
            extra_inputs: tuple = (), donate: bool = False) -> jax.Array:
    n, k = x.shape
    itemsize = jnp.dtype(x.dtype).itemsize
    tile_rows = _pick_tile_rows(n, k, itemsize, sub, requested=tile_rows)
    grid = (pl.cdiv(n, tile_rows),)

    in_specs = [pl.BlockSpec((tile_rows, k), lambda i: (i, 0))]
    for arr in extra_inputs:
        # Constant index_map -> DMA'd once, resident in VMEM for the whole grid.
        in_specs.append(pl.BlockSpec(tuple(arr.shape), lambda i: (0, 0)))

    # VMEM budget derived from the actual tile (review item): double-buffered
    # in + out (HBM dtype) + f32 temporaries (e and the broadcast denominator)
    # + resident extras + margin.  Always >= 16 MiB so v5e's low scoped default
    # never bites; always far below every generation's physical VMEM.
    blk_hbm = tile_rows * k * itemsize
    blk_f32 = tile_rows * k * 4
    extra_bytes = sum(int(a.size) * jnp.dtype(a.dtype).itemsize
                      for a in extra_inputs)
    vmem_limit = 4 * blk_hbm + 2 * blk_f32 + 2 * extra_bytes + 2 * _MIB
    vmem_limit = int(max(vmem_limit, 16 * _MIB))

    return pl.pallas_call(
        kernel,
        out_shape=jax.ShapeDtypeStruct((n, k), x.dtype),
        grid_spec=pltpu.PrefetchScalarGridSpec(
            num_scalar_prefetch=0,
            grid=grid,
            in_specs=in_specs,
            out_specs=pl.BlockSpec((tile_rows, k), lambda i: (i, 0)),
        ),
        compiler_params=pltpu.CompilerParams(
            dimension_semantics=("parallel",),   # rows shard across v7x's 2 TCs
            vmem_limit_bytes=vmem_limit,         # explicit: v5e default is 16 MiB
        ),
        input_output_aliases=({0: 0} if donate else {}),
    )(x, *extra_inputs)


# --------------------------------------------------------------------------- #
# Public wrapper
# --------------------------------------------------------------------------- #
def deltas_to_lamdas(betas: jax.Array, *, tile_rows: int | None = None,
                     donate_input: bool = False) -> jax.Array:
    """Row-wise normalization of exp(betas) over axis 1 (DeltasToLamdas).

    donate_input=True aliases the input buffer to the output
    (input_output_aliases={0: 0}); the caller must not reuse `betas` after.
    """
    assert betas.ndim == 2, "torch.t requires a 2-D tensor"
    n, k = betas.shape
    itemsize = jnp.dtype(betas.dtype).itemsize
    sub = max(8, 32 // itemsize)   # sublane pack: 8 f32 / 16 bf16 / 32 int8

    # Lane-dense packing for small K dividing 128: a row-major reshape (free)
    # packs g = 128 // K consecutive rows per 128-wide lane row.
    if 0 < k < 128 and 128 % k == 0 and n >= 128 // k:
        g = 128 // k
        n_main = (n // g) * g
        smat = _segment_matrix(k)

        def packed_call(rows2d):                       # rows2d: (m, K), m % g == 0
            m = rows2d.shape[0]
            out = _launch(rows2d.reshape(m // g, 128), _packed_kernel,
                          tile_rows=tile_rows, sub=sub,
                          extra_inputs=(smat,), donate=donate_input)
            return out.reshape(m, k)

        if n_main == n:
            return packed_call(betas)
        # N % g != 0: keep the packed path for the bulk; a tiny plain-kernel
        # call handles the <= g-1 trailing rows.  The slice + concatenate cost
        # one extra pass over the main part in HBM, still cheaper than masked
        # K/128-lane stores for the whole tensor.
        main = packed_call(betas[:n_main])
        rem = _launch(betas[n_main:], _rowwise_kernel, tile_rows=None, sub=sub)
        return jnp.concatenate([main, rem], axis=0)

    # General path: K on lanes (lane-dense when K is a multiple of 128;
    # otherwise the lane waste / masked stores are accepted).
    return _launch(betas, _rowwise_kernel, tile_rows=tile_rows, sub=sub,
                   donate=donate_input)


# --------------------------------------------------------------------------- #
# Self-test
# --------------------------------------------------------------------------- #
if __name__ == "__main__":
    key = jax.random.PRNGKey(0)
    ks = jax.random.split(key, 6)

    def ref_fn(b):
        e = jnp.exp(b.astype(jnp.float32))
        return e / jnp.sum(e, axis=1, keepdims=True)

    cases = [
        ("packed f32  (N=256, K=32)",
         jax.random.normal(ks[0], (256, 32), jnp.float32), 1e-4, 1e-6),
        ("packed f32  remainder (N=70, K=32)",
         jax.random.normal(ks[1], (70, 32), jnp.float32), 1e-4, 1e-6),
        ("plain  f32  (N=200, K=256, ragged N)",
         jax.random.normal(ks[2], (200, 256), jnp.float32), 1e-5, 1e-6),
        ("plain  f32  fallback (N=40, K=96)",
         jax.random.normal(ks[3], (40, 96), jnp.float32), 1e-5, 1e-6),
        ("packed bf16 (N=256, K=32)",
         jax.random.normal(ks[0], (256, 32), jnp.float32).astype(jnp.bfloat16),
         2e-2, 1e-3),
        ("plain  bf16 (N=200, K=256)",
         jax.random.normal(ks[2], (200, 256), jnp.float32).astype(jnp.bfloat16),
         2e-2, 1e-3),
    ]

    for name, betas, rtol, atol in cases:
        out = jax.block_until_ready(deltas_to_lamdas(betas))
        assert out.shape == betas.shape and out.dtype == betas.dtype, name
        expect = ref_fn(betas)
        got = out.astype(jnp.float32)
        assert jnp.allclose(got, expect, rtol=rtol, atol=atol), f"mismatch: {name}"
        rowsum = jnp.sum(got, axis=1)
        assert jnp.allclose(rowsum, jnp.ones_like(rowsum), rtol=1e-2, atol=1e-2), \
            f"row sums != 1: {name}"

    # Donated-input variant (input_output_aliases={0: 0}); reference computed
    # before the call, and the donated array is not reused afterwards.
    x_d = jax.random.normal(ks[4], (64, 128), jnp.float32)
    expect_d = ref_fn(x_d)
    out_d = jax.block_until_ready(deltas_to_lamdas(x_d, donate_input=True))
    assert jnp.allclose(out_d, expect_d, rtol=1e-5, atol=1e-6), "mismatch: donated"

    print("KERNEL_OK")
</pallas_src>

<mosaic_0001>
module attributes {stable_mosaic.version = 11 : i64} {
  func.func @_packed_kernel(%arg0: i32, %arg1: memref<32x128xf32, #tpu.memory_space<vmem>>, %arg2: memref<128x128xbf16, #tpu.memory_space<vmem>>, %arg3: memref<32x128xf32, #tpu.memory_space<vmem>>) attributes {dimension_semantics = [#tpu.dimension_semantics<parallel>], iteration_bounds = array<i64: 2>, scalar_prefetch = 0 : i64, scratch_operands = 0 : i64, tpu.core_type = #tpu.core_type<tc>, window_params = [{transform_indices = @transform_0, window_bounds = array<i64: 32, 128>}, {pipeline_mode = #tpu.pipeline_mode<synchronous>, transform_indices = @transform_1, window_bounds = array<i64: 128, 128>}, {transform_indices = @transform_2, window_bounds = array<i64: 32, 128>}]} {
    %c0 = arith.constant 0 : index
    %c0_0 = arith.constant 0 : index
    %0 = vector.load %arg1[%c0, %c0_0] : memref<32x128xf32, #tpu.memory_space<vmem>>, vector<32x128xf32>
    %1 = math.exp %0 : vector<32x128xf32>
    %c0_1 = arith.constant 0 : index
    %c0_2 = arith.constant 0 : index
    %2 = vector.load %arg2[%c0_1, %c0_2] : memref<128x128xbf16, #tpu.memory_space<vmem>>, vector<128x128xbf16>
    %3 = arith.truncf %1 : vector<32x128xf32> to vector<32x128xbf16>
    %4 = arith.extf %3 : vector<32x128xbf16> to vector<32x128xf32>
    %5 = arith.subf %1, %4 : vector<32x128xf32>
    %6 = arith.truncf %5 : vector<32x128xf32> to vector<32x128xbf16>
    %cst = arith.constant dense<0.000000e+00> : vector<32x128xf32>
    %7 = tpu.matmul %3, %2, %cst {dimension_numbers = #tpu.dot_dimension_numbers<[1], [0], [0], [1], [0, 0, 1, 1], [], []>} : vector<32x128xbf16>, vector<128x128xbf16>, vector<32x128xf32> -> vector<32x128xf32>
    %cst_3 = arith.constant dense<0.000000e+00> : vector<32x128xf32>
    %8 = tpu.matmul %6, %2, %cst_3 {dimension_numbers = #tpu.dot_dimension_numbers<[1], [0], [0], [1], [0, 0, 1, 1], [], []>} : vector<32x128xbf16>, vector<128x128xbf16>, vector<32x128xf32> -> vector<32x128xf32>
    %9 = arith.addf %7, %8 : vector<32x128xf32>
    %10 = arith.divf %1, %9 : vector<32x128xf32>
    %c0_4 = arith.constant 0 : index
    %c0_5 = arith.constant 0 : index
    %11 = vector.load %arg3[%c0_4, %c0_5] : memref<32x128xf32, #tpu.memory_space<vmem>>, vector<32x128xf32>
    tpu.vector_store %arg3[%c0_4, %c0_5], %10 {strides = array<i32>} : memref<32x128xf32, #tpu.memory_space<vmem>>, vector<32x128xf32>,
    return
  }
  func.func @transform_0(%arg0: i32) -> (i32, i32) {
    %c0_i32 = arith.constant 0 : i32
    %c0_i32_0 = arith.constant 0 : i32
    return %arg0, %c0_i32 : i32, i32
  }
  func.func @transform_1(%arg0: i32) -> (i32, i32) {
    %c0_i32 = arith.constant 0 : i32
    %c0_i32_0 = arith.constant 0 : i32
    %c0_i32_1 = arith.constant 0 : i32
    return %c0_i32, %c0_i32_0 : i32, i32
  }
  func.func @transform_2(%arg0: i32) -> (i32, i32) {
    %c0_i32 = arith.constant 0 : i32
    %c0_i32_0 = arith.constant 0 : i32
    return %arg0, %c0_i32 : i32, i32
  }
}

</mosaic_0001>

<bundles_post_ra>
// kernel: tpu_custom_call.1
= control target key start
LH: loop header
LB: loop body
LE: loop exit
PB: predicated region body
PF: predicated region fallthrough
CT: control target
= control target key end

     0   :  { %7 = vsyncpa [#allocation3], 0  ;;  %s977_s0 = inlined_call_operand.hbm [shape: f32[64,128], index: 0, kind: input, shape index: {}]   ;;  %s978_s1 = inlined_call_operand.hbm [shape: bf16[128,128], index: 1, kind: input, shape index: {}]   ;;  %s979_s2 = inlined_call_operand.hbm [shape: f32[64,128], index: 2, kind: output, shape index: {}]  }
   0x1   :  { %9 = vsyncpa [#allocation3 + $0x1], 0 }
   0x2   :  { %10 = vsyncpa [#allocation6], 0 }
   0x3   :  { %11 = vsyncpa [#allocation4], 0 }
   0x4   :  { %13 = vsyncpa [#allocation4 + $0x1], 0  ;;  %s796_s9 = smov 0   ;;  %s798_s10 = smov 0  }
   0x5   :  { %s800_s11 = smov 0   ;;  %s802_s12 = smov 0  }
   0x6 LB: > { %s817_s13 = sadd.s32 4294967295, %s770_s12   ;;  %s475_s14 = sadd.s32 4294967294, %s770_s12   ;;  %s770_s12 = sphi %s802_s12, %s1001_s12   ;;  %s766_s11 = sphi %s800_s11, %s1000_s11   ;;  %s762_s10 = sphi %s798_s10, %s999_s10   ;;  %s758_s9 = sphi %s796_s9, %s998_s9  }
   0x7   : > { %p39_p0 = scmp.ne.s32.totalorder %s762_s10, %s758_s9  ;;  %p980_p1 = scmp.eq.s32.totalorder %s817_s13, 0 }
   0x8   : > { %p90_p3 = scmp.eq.s32.totalorder %s475_s14, 1  ;;  %p476_p5 = scmp.ge.s32.totalorder %s770_s12, 1 }
   0x9   : > { %p826_p4 = por %p980_p1, %p39_p0  ;;  %p97_p7 = scmp.lt.s32.totalorder %s770_s12, 3 }
   0xa   : > { %p831_p6 = por %p90_p3, %p39_p0  ;;  %s772_s18 = smov [#allocation5]  }
   0xb   : > { %s984_s15 = scalar_select %p826_p4, 1, 0 }
   0xc   : > { %s985_s16 = scalar_select %p831_p6, 1, 0 }
   0xd   : > { %p836_p8 = pnand %p476_p5, %p97_p7  ;;  %s109_s19 = sshll.u32 %s772_s18, 4  ;;  %s110_s19 = int_to_ptr.vmem [resolvable:$true] %s109_s19 }
   0xe   : > { %s850_s21 = sadd.s32 1, %s770_s12   ;;  %s26_s22 = sadd.s32 1, %s766_s11 }
   0xf   : > { %s986_s17 = scalar_select %p836_p8, 1, 0 }
  0x10   : > { %p569_p9 = pneg %p836_p8  ;;  %s23_s23 = ssub.s32 %s770_s12, %s850_s21 }
  0x11   : > { %s659_s24 = scalar_lea.vmem %s110_s19, 1024  ;;  %p667_p5 = scmp.lt.s32.totalorder %s110_s19, %s110_s19 }
  0x12   : > { %p845_p11 = pnand %p569_p9, %p980_p1  ;;  %p660_p13 = scmp.ne.s32.totalorder %s110_s19, %s659_s24 }
  0x13   : > { %p668_p7 = scmp.lt.s32.totalorder %s659_s24, %s659_s24 }
  0x14   : > { %p650_p12 = pneg %p845_p11 }
  0x15   : > { %p669_p10 = por %p668_p7, %p667_p5 }
  0x16   : > { %p662_p0 = pnand %p660_p13, %p650_p12 }
  0x18   : > { %p663_p3 = pneg %p662_p0 }
  0x1a   : > { %p670_p2 = pnand %p669_p10, %p663_p3 }
  0x1c   : > { %673 = shalt.err (!%p670_p2)
}
  0x1d   : > { %s773_s25 = smov 64   ;;  %s774_s26 = smov 4  }
  0x1e   : > { %572 = dma.hbm_to_vmem [thread:$0]  (!%p845_p11), %s978_s1, 1024, %s110_s19, [#allocation6], %s773_s25, %s773_s25, %s774_s26  }
  0x1f   : > { %p24_p9 = scmp.eq.s32.totalorder %s23_s23, 0  ;;  %p33_p12 = scmp.ne.s32.totalorder %s766_s11, %s762_s10 }
  0x20   : > { %p34_p10 = scmp.eq.s32.totalorder %s770_s12, 0  ;;  %p582_p2 = scmp.lt.s32.totalorder %s770_s12, 2 }
  0x21   : > { %s867_s29 = scalar_select %p24_p9, %s766_s11, %s26_s22  }
  0x22   : > { %p35_p13 = por %p34_p10, %p33_p12  ;;  %p988_p0 = scmp.eq.s32.totalorder %s817_s13, 1 }
  0x23   : > { %s123_s3 = sand.u32 1, %s766_s11   ;;  %s499_s4 = sshll.u32 %s770_s12, 9 }
  0x24   : > { %p871_p3 = por %p988_p0, %p33_p12  ;;  %s479_s5 = sshll.u32 %s123_s3, 5 }
  0x25   : > { %s880_s8 = scalar_lea.hbm %s977_s0, %s499_s4  ;;  %s127_s14 = scalar_lea.vmem [#allocation2], %s479_s5 }
  0x26   : > { %s989_s30 = scalar_select %p871_p3, 1, 0 }
  0x27   : > { %s134_s18 = sshll.u32 %s127_s14, 4  ;;  %p882_p11 = pnand %p582_p2, %p35_p13  ;;  %s886_s18 = int_to_ptr.vmem [resolvable:$true] %s134_s18 }
  0x28   : > { %s888_s20 = scalar_lea.sflag [#allocation3], %s123_s3  ;;  %s674_s22 = scalar_lea.hbm %s880_s8, 512 }
  0x29   : > { %p675_p5 = scmp.ne.s32.totalorder %s880_s8, %s674_s22  ;;  %p676_p7 = pneg %p882_p11 }
  0x2a   : > { %s679_s25 = scalar_lea.hbm %s977_s0, 1024  ;;  %p680_p10 = scmp.lt.s32.totalorder %s880_s8, %s977_s0 }
  0x2b   : > { %p677_p9 = pnand %p676_p7, %p675_p5  ;;  %p681_p2 = scmp.lt.s32.totalorder %s679_s25, %s674_s22 }
  0x2d   : > { %p678_p12 = pneg %p677_p9  ;;  %p682_p13 = por %p681_p2, %p680_p10 }
  0x2f   : > { %p683_p0 = pnand %p682_p13, %p678_p12 }
  0x31   : > { %686 = shalt.err (!%p683_p0)
}
  0x32   : > { %s687_s28 = scalar_lea.vmem %s886_s18, 512  ;;  %s775_s3 = smov [#allocation2]  }
  0x33   : > { %p688_p1 = scmp.ne.s32.totalorder %s886_s18, %s687_s28  ;;  %s692_s4 = sshll.u32 %s775_s3, 4  ;;  %s693_s4 = int_to_ptr.vmem [resolvable:$false] %s692_s4 }
  0x34   : > { %s694_s5 = scalar_lea.vmem %s693_s4, 1024  ;;  %p695_p9 = scmp.lt.s32.totalorder %s886_s18, %s693_s4 }
  0x35   : > { %p690_p6 = pnand %p688_p1, %p676_p7  ;;  %p696_p3 = scmp.lt.s32.totalorder %s694_s5, %s687_s28 }
  0x37   : > { %p691_p5 = pneg %p690_p6  ;;  %p697_p4 = por %p696_p3, %p695_p9 }
  0x39   : > { %p698_p8 = pnand %p697_p4, %p691_p5 }
  0x3b   : > { %701 = shalt.err (!%p698_p8)
}
  0x3c   : > { %s776_s6 = smov 128   ;;  %s777_s7 = smov 8  }
  0x3d   : > { %576 = dma.hbm_to_vmem [thread:$0]  (!%p882_p11), %s880_s8, 512, %s886_s18, %s888_s20, %s776_s6, %s776_s6, %s777_s7  }
  0x3e   : > { %p991_p1 = scmp.ne.s32.totalorder %s986_s17, 0 }
  0x3f   : > { %s912_s14 = sand.u32 (!%p991_p1), 1, %s762_s10   ;;  %p992_p4 = scmp.ne.s32.totalorder (!%p991_p1), %s984_s15, 0 }
  0x40   : > { %146 = sbr.rel (%p991_p1) target bundleno = 337 (0x151), region = 28  ;;  %s483_s22 = sshll.u32 (!%p991_p1), %s912_s14, 5 }
  0x41   : > { %s149_s23 = scalar_lea.sflag (!%p991_p1), [#allocation3], %s912_s14  ;;  %s152_s24 = scalar_lea.vmem (!%p991_p1), [#allocation2], %s483_s22 }
  0x45   : > { %745 = dma.done.wait (%p992_p4), %s149_s23, 512  }
  0x46   : > { %747 = vsyncadd (%p992_p4), %s149_s23, 4294966784  ;;  %p993_p6 = scmp.eq.s32.totalorder %s817_s13, 0 }
  0x48   : > { %749 = dma.done.wait (%p993_p6), [#allocation6], 1024   ;;  %p994_p8 = pmov %p993_p6 }
  0x49   : > { %v624_v0 = vld [vmem:[#allocation5 + $0x38] sm:$0xff]   ;;  %v625_v1 = vld [vmem:[#allocation5 + $0x30] sm:$0xff]   ;;  %v626_v2 = vld [vmem:[#allocation5 + $0x28] sm:$0xff]   ;;  %s176_s15 = scalar_lea.vmem [#allocation7], %s483_s22  ;;  %s500_s17 = sshll.u32 %s817_s13, 9 }
  0x4a   : > { %751 = vsyncadd (%p994_p8), [#allocation6], 4294966272  ;;  %521 = vmatprep.subr.bf16.mxu0 %v624_v0  ;;  %541 = vmatprep.subr.bf16.mxu1 %v624_v0  ;;  %v627_v3 = vld [vmem:[#allocation5 + $0x20] sm:$0xff]   ;;  %v181_v5 = vld [vmem:[%s152_s24 + $0x8] sm:$0xff]  ;;  %s392_s8 = sshll.u32 %s176_s15, 4  ;;  %s932_s20 = scalar_lea.hbm %s979_s2, %s500_s17  ;;  %s934_s8 = int_to_ptr.vmem [resolvable:$true] %s392_s8 }
  0x4b   : > { %522 = vmatpush3.bf16.msra.mxu0 %v624_v0  ;;  %542 = vmatpush3.bf16.msra.mxu1 %v624_v0  ;;  %v180_v4 = vld [vmem:[%s152_s24] sm:$0xff]  ;;  %v182_v6 = vld [vmem:[%s152_s24 + $0x10] sm:$0xff]  ;;  %v186_v8 = vmul.f32 1.442695, %v181_v5  ;;  %v183_v9 = vld [vmem:[%s152_s24 + $0x18] sm:$0xff]  ;;  %s379_s25 = scalar_lea.sflag [#allocation4], %s912_s14 }
  0x4c   : > { %523 = vmatprep.subr.bf16.mxu0 %v625_v1  ;;  %543 = vmatprep.subr.bf16.mxu1 %v625_v1  ;;  %v184_v7 = vmul.f32 1.442695, %v180_v4  ;;  %v188_v10 = vmul.f32 1.442695, %v182_v6  ;;  %v190_v11 = vmul.f32 1.442695, %v183_v9 }
  0x4d   : > { %v628_v12 = vld [vmem:[#allocation5 + $0x18] sm:$0xff]   ;;  %v629_v13 = vld [vmem:[#allocation5 + $0x10] sm:$0xff]   ;;  %v630_v14 = vld [vmem:[#allocation5 + $0x8] sm:$0xff]   ;;  %s702_s13 = scalar_lea.vmem %s934_s8, 512  ;;  %p995_p11 = scmp.ne.s32.totalorder %s989_s30, 0 }
  0x4e   : > { %632 = vpow2.f32 %v184_v7  ;;  %v631_v16 = vld [vmem:[#allocation5] sm:$0xff]   ;;  %p703_p3 = scmp.ne.s32.totalorder %s934_s8, %s702_s13  ;;  %s778_s26 = smov [#allocation7]  }
  0x4f   : > { %524 = vmatpush3.bf16.msra.mxu0 %v625_v1  ;;  %544 = vmatpush3.bf16.msra.mxu1 %v625_v1  ;;  %634 = vpow2.f32 %v186_v8  ;;  %s706_s27 = sshll.u32 %s778_s26, 4  ;;  %s707_s27 = int_to_ptr.vmem [resolvable:$false] %s706_s27 }
  0x50   : > { %525 = vmatprep.subr.bf16.mxu0 %v626_v2  ;;  %545 = vmatprep.subr.bf16.mxu1 %v626_v2  ;;  %636 = vpow2.f32 %v188_v10  ;;  %p704_p7 = pnand %p703_p3, %p995_p11  ;;  %s708_s28 = scalar_lea.vmem %s707_s27, 1024 }
  0x51   : > { %638 = vpow2.f32 %v190_v11  ;;  %p709_p10 = scmp.lt.s32.totalorder %s934_s8, %s707_s27  ;;  %p710_p2 = scmp.lt.s32.totalorder %s708_s28, %s702_s13 }
  0x52   : > { %p705_p12 = pneg %p704_p7 }
  0x53   : > { %526 = vmatpush3.bf16.msra.mxu0 %v626_v2  ;;  %546 = vmatpush3.bf16.msra.mxu1 %v626_v2  ;;  %p711_p13 = por %p710_p2, %p709_p10 }
  0x54   : > { %527 = vmatprep.subr.bf16.mxu0 %v627_v3  ;;  %547 = vmatprep.subr.bf16.mxu1 %v627_v3 }
  0x55   : > { %p712_p0 = pnand %p711_p13, %p705_p12 }
  0x57   : > { %528 = vmatpush3.bf16.msra.mxu0 %v627_v3  ;;  %548 = vmatpush3.bf16.msra.mxu1 %v627_v3 }
  0x58   : > { %529 = vmatprep.subr.bf16.mxu0 %v628_v12  ;;  %549 = vmatprep.subr.bf16.mxu1 %v628_v12 }
  0x5b   : > { %530 = vmatpush3.bf16.msra.mxu0 %v628_v12  ;;  %550 = vmatpush3.bf16.msra.mxu1 %v628_v12  ;;  %v633_v15 = vpop.eup %632 }
  0x5c   : > { %531 = vmatprep.subr.bf16.mxu0 %v629_v13  ;;  %551 = vmatprep.subr.bf16.mxu1 %v629_v13  ;;  %v635_v17 = vpop.eup %634 }
  0x5d   : > { %v637_v18 = vpop.eup %636  ;;  %v208_v19 = vpack.c.bf16 %v635_v17, %v633_v15 }
  0x5e   : > { %v639_v20 = vpop.eup %638 }
  0x5f   : > { %532 = vmatpush3.bf16.msra.mxu0 %v629_v13  ;;  %552 = vmatpush3.bf16.msra.mxu1 %v629_v13  ;;  %v210_v21 = vunpack.c.l.bf16 %v208_v19  ;;  %v211_v22 = vunpack.c.h.bf16 %v208_v19  ;;  %v209_v23 = vpack.c.bf16 %v639_v20, %v637_v18 }
  0x60   : > { %533 = vmatprep.subr.bf16.mxu0 %v630_v14  ;;  %553 = vmatprep.subr.bf16.mxu1 %v630_v14 }
  0x61   : > { %557 = vmatprep.mubr.bf16.mxu1 %v208_v19  ;;  %v214_v24 = vsub.f32 %v633_v15, %v210_v21  ;;  %v215_v25 = vsub.f32 %v635_v17, %v211_v22  ;;  %v212_v26 = vunpack.c.l.bf16 %v209_v23  ;;  %v213_v27 = vunpack.c.h.bf16 %v209_v23 }
  0x63   : > { %534 = vmatpush3.bf16.msra.mxu0 %v630_v14  ;;  %554 = vmatpush3.bf16.msra.mxu1 %v630_v14  ;;  %v218_v28 = vpack.c.bf16 %v215_v25, %v214_v24  ;;  %v216_v29 = vsub.f32 %v637_v18, %v212_v26  ;;  %v217_v30 = vsub.f32 %v639_v20, %v213_v27 }
  0x64   : > { %535 = vmatprep.subr.bf16.mxu0 %v631_v16  ;;  %555 = vmatprep.subr.bf16.mxu1 %v631_v16 }
  0x65   : > { %537 = vmatprep.mubr.bf16.mxu0 %v218_v28  ;;  %v219_v31 = vpack.c.bf16 %v217_v30, %v216_v29 }
  0x67   : > { %536 = vmatpush3.bf16.msra.mxu0 %v631_v16  ;;  %556 = vmatpush3.bf16.msra.mxu1 %v631_v16 }
  0x6a   : > { %558 = vmatmul.mubr.bf16.vlgmr.msra.gmra.mxu1 %v209_v23  ;;  %538 = vmatmul.mubr.bf16.vlgmr.msra.gmra.mxu0 %v219_v31 }
 0x12a   : > { %v559_v32 = vpop.f32.mrf.mxu1  ;;  %v539_v33 = vpop.f32.mrf.mxu0 }
 0x12b   : > { %v360_v35 = vadd.f32 %v559_v32, %v539_v33 }
 0x12c   : > { %v351_v34 = vpop.f32.mrf.mxu1  ;;  %v302_v36 = vpop.f32.mrf.mxu0 }
 0x12d   : > { %640 = vrcp.f32 %v360_v35  ;;  %v352_v38 = vadd.f32 %v351_v34, %v302_v36 }
 0x12e   : > { %v560_v37 = vpop.f32.mrf.mxu1  ;;  %v540_v39 = vpop.f32.mrf.mxu0 }
 0x12f   : > { %642 = vrcp.f32 %v352_v38  ;;  %v363_v41 = vadd.f32 %v560_v37, %v540_v39 }
 0x130   : > { %v354_v40 = vpop.f32.mrf.mxu1  ;;  %v305_v42 = vpop.f32.mrf.mxu0 }
 0x131   : > { %644 = vrcp.f32 %v363_v41  ;;  %v355_v43 = vadd.f32 %v354_v40, %v305_v42 }
 0x133   : > { %646 = vrcp.f32 %v355_v43 }
 0x13a   : > { %v641_v44 = vpop.eup %640 }
 0x13b   : > { %v371_v45 = vmul.f32 %v641_v44, %v637_v18 }
 0x13c   : > { %v643_v46 = vpop.eup %642 }
 0x13d   : > { %376 = vst [vmem:[%s176_s15 + $0x10] sm:$0xff] %v371_v45  ;;  %v367_v47 = vmul.f32 %v643_v46, %v633_v15 }
 0x13e   : > { %v645_v48 = vpop.eup %644 }
 0x13f   : > { %374 = vst [vmem:[%s176_s15] sm:$0xff] %v367_v47  ;;  %v373_v49 = vmul.f32 %v645_v48, %v639_v20 }
 0x140   : > { %v647_v50 = vpop.eup %646 }
 0x141   : > { %377 = vst [vmem:[%s176_s15 + $0x18] sm:$0xff] %v373_v49  ;;  %v369_v51 = vmul.f32 %v647_v50, %v635_v17 }
 0x143   : > { %375 = vst [vmem:[%s176_s15 + $0x8] sm:$0xff] %v369_v51 }
 0x144   : > { %715 = shalt.err (!%p712_p0)
}
 0x145   : > { %s716_s3 = scalar_lea.hbm %s932_s20, 512  ;;  %s720_s6 = scalar_lea.hbm %s979_s2, 1024 }
 0x146   : > { %p717_p5 = scmp.ne.s32.totalorder %s932_s20, %s716_s3  ;;  %p721_p4 = scmp.lt.s32.totalorder %s932_s20, %s979_s2 }
 0x147   : > { %p722_p6 = scmp.lt.s32.totalorder %s720_s6, %s716_s3 }
 0x148   : > { %p718_p9 = pnand %p717_p5, %p995_p11 }
 0x149   : > { %p723_p8 = por %p722_p6, %p721_p4 }
 0x14a   : > { %p719_p1 = pneg %p718_p9 }
 0x14c   : > { %p724_p3 = pnand %p723_p8, %p719_p1 }
 0x14e   : > { %727 = shalt.err (!%p724_p3)
}
 0x14f   : > { %s779_s23 = smov 128   ;;  %s780_s24 = smov 8  }
 0x150   : > { %567 = dma.vmem_to_hbm [thread:$0]  (%p995_p11), %s934_s8, 512, %s932_s20, %s379_s25, %s779_s23, %s779_s23, %s780_s24  }
 0x151 PF: > { %s407_s15 = sand.u32 1, %s758_s9   ;;  %p996_p7 = scmp.ne.s32.totalorder %s985_s16, 0 }
 0x152   : > { %p997_p12 = scmp.ge.s32.totalorder %s770_s12, 2  ;;  %s408_s17 = scalar_lea.sflag [#allocation4], %s407_s15 }
 0x154   : > { %p578_p10 = pnand %p997_p12, %p996_p7 }
 0x156   : > { %p579_p2 = pneg %p578_p10 }
 0x158   : > { %753 = dma.done.wait (%p579_p2), %s408_s17, 512  }
 0x159   : > { %755 = vsyncadd (%p579_p2), %s408_s17, 4294966784  ;;  %p16_p13 = scmp.ge.s32.totalorder %s850_s21, 4   ;;  %s998_s9 = smov %s762_s10 }
 0x15a   : > { %s999_s10 = smov %s766_s11  ;;  %s1000_s11 = smov %s867_s29 }
 0x15b   : > { %s1001_s12 = smov %s850_s21  ;;  %18 = sbr.rel (!%p16_p13) target bundleno = 6 (0x6), region = 77 }
 0x160   :  { %413 = vsyncpa [#allocation3], 1 }
 0x161   :  { %415 = vsyncpa [#allocation3 + $0x1], 1 }
 0x162   :  { %416 = vsyncpa [#allocation6], 1 }
 0x163   :  { %417 = vsyncpa [#allocation4], 1 }
 0x164   :  { %419 = vsyncpa [#allocation4 + $0x1], 1 }

</bundles_post_ra>
